<compile_context>
chip_gen: v7x
topology: tpu7x:2x2x1
jax: 0.10.0
libtpu: 0.0.40
codegen_flags: <defaults>
</compile_context>

<pallas_src>
import jax
import jax.numpy as jnp
from jax.experimental import pallas as pl
from jax.experimental.pallas import tpu as pltpu

LN_EPS = 1e-5


def _round_up(v, m):
    return (v + m - 1) // m * m


def temporal_predictor(enc_out, enc_out_mask, params, matmul_dtype=jnp.float32):
    """Pallas forward pass of TemporalPredictor (eval mode).

    enc_out:      (B, T, input_size)  float32
    enc_out_mask: (B, T, 1)           float32
    Returns (B, T, n_predictions) float32.
    """
    B, T, Cin = enc_out.shape
    K, _, Cf = params["w1"].shape
    n_pred = params["wf"].shape[-1]
    pad = K // 2
    T_pad = _round_up(T, 128)  # time lives on the lane axis -> lane-dense

    # ---- wrapper-side layout plumbing (XLA): NCL layout, pad T, fold weights.
    x_ncl = jnp.pad(jnp.transpose(enc_out, (0, 2, 1)),
                    ((0, 0), (0, 0), (0, T_pad - T)))           # (B, Cin, T_pad)
    m_ncl = jnp.pad(jnp.transpose(enc_out_mask, (0, 2, 1)),
                    ((0, 0), (0, 0), (0, T_pad - T)))           # (B, 1, T_pad)

    # conv weights (K, Cin, Cout) -> folded (Cout, K*Cin) for one im2col matmul
    w1 = jnp.transpose(params["w1"].reshape(K * Cin, Cf)).astype(matmul_dtype)
    w2 = jnp.transpose(params["w2"].reshape(K * Cf, Cf)).astype(matmul_dtype)
    b1 = params["b1"].reshape(Cf, 1)
    g1 = params["g1"].reshape(Cf, 1)
    be1 = params["be1"].reshape(Cf, 1)
    b2 = params["b2"].reshape(Cf, 1)
    g2 = params["g2"].reshape(Cf, 1)
    be2 = params["be2"].reshape(Cf, 1)
    wf = params["wf"]                        # (Cf, n_pred), stays f32 (VPU path)
    bf = params["bf"].reshape(n_pred, 1)

    weights = (w1, b1, g1, be1, w2, b2, g2, be2, wf, bf)

    def kernel(enc_ref, mask_ref,
               w1_ref, b1_ref, g1_ref, be1_ref,
               w2_ref, b2_ref, g2_ref, be2_ref,
               wf_ref, bf_ref, out_ref):
        mask = mask_ref[0]                          # (1, T_pad)
        x = enc_ref[0] * mask                       # (Cin, T_pad), input masking

        # Per-tap boundary masks (zero conv taps whose read position falls
        # outside [0, T) == Conv1d zero "same" padding at the true sequence
        # end).  Computed once, shared by both conv layers (hoisted so the
        # iota + compares are not re-emitted per layer).
        t_idx = jax.lax.broadcasted_iota(jnp.int32, (1, T_pad), 1)
        tap_mask = [None] * K
        for k in range(K):
            d = k - pad
            if d != 0:
                tap_mask[k] = ((t_idx + d >= 0) & (t_idx + d < T)).astype(jnp.float32)

        def conv_relu_norm(h, w_ref, b_ref, g_ref, be_ref):
            cout = w_ref.shape[0]
            taps = []
            for k in range(K):                      # static unroll over taps
                d = k - pad
                if d == 0:
                    taps.append(h)
                else:
                    shifted = pltpu.roll(h, shift=(-d) % T_pad, axis=1)  # XLU
                    taps.append(shifted * tap_mask[k])                   # VPU
            # im2col slab (K*Cin, T_pad): single MXU matmul, contraction K*Cin
            slab = taps[0] if K == 1 else jnp.concatenate(taps, axis=0)
            y = jnp.dot(w_ref[...], slab.astype(w_ref.dtype),
                        preferred_element_type=jnp.float32)
            y = jnp.maximum(y + b_ref[...], 0.0)    # conv bias + ReLU (f32)
            # LayerNorm over channels, fused one-pass stats (biased var, eps)
            inv_c = 1.0 / cout
            s1 = jnp.sum(y, axis=0, keepdims=True)
            s2 = jnp.sum(y * y, axis=0, keepdims=True)
            mean = s1 * inv_c
            var = jnp.maximum(s2 * inv_c - mean * mean, 0.0)
            inv = jax.lax.rsqrt(var + LN_EPS)       # EUP
            # TODO(synk): dropout is identity in eval mode; training-mode
            # dropout (pltpu.prng_*) is not implemented.
            return (y - mean) * inv * g_ref[...] + be_ref[...]

        h = conv_relu_norm(x, w1_ref, b1_ref, g1_ref, be1_ref)
        h = conv_relu_norm(h, w2_ref, b2_ref, g2_ref, be2_ref)

        # Final Linear(filter_size -> n_pred): n_pred is tiny, so use a VPU
        # multiply + sublane (XLU) reduction instead of issuing an N=1 MXU
        # matmul; the result stays lane-dense in T.
        rows = [jnp.sum(h * wf_ref[:, p:p + 1], axis=0, keepdims=True)
                for p in range(n_pred)]
        out = rows[0] if n_pred == 1 else jnp.concatenate(rows, axis=0)
        out = (out + bf_ref[...]) * mask            # output masking
        out_ref[0] = out.astype(out_ref.dtype)

    def full_spec(a):
        nd = a.ndim
        return pl.BlockSpec(a.shape, lambda b, _nd=nd: (0,) * _nd)

    in_specs = [
        pl.BlockSpec((1, Cin, T_pad), lambda b: (b, 0, 0)),
        pl.BlockSpec((1, 1, T_pad), lambda b: (b, 0, 0)),
    ] + [full_spec(a) for a in weights]

    out_specs = pl.BlockSpec((1, n_pred, T_pad), lambda b: (b, 0, 0))

    out_ncl = pl.pallas_call(
        kernel,
        out_shape=jax.ShapeDtypeStruct((B, n_pred, T_pad), jnp.float32),
        grid_spec=pltpu.PrefetchScalarGridSpec(
            num_scalar_prefetch=0,
            grid=(B,),
            in_specs=in_specs,
            out_specs=out_specs,
        ),
        compiler_params=pltpu.CompilerParams(
            dimension_semantics=("parallel",),
            vmem_limit_bytes=48 * 1024 * 1024,
        ),
    )(x_ncl, m_ncl, *weights)

    # back to (B, T, n_pred); drop the lane padding
    return jnp.transpose(out_ncl, (0, 2, 1))[:, :T, :]


def temporal_predictor_ref(enc_out, enc_out_mask, params):
    """Pure-JAX reference mirroring the PyTorch module (eval mode)."""
    K = params["w1"].shape[0]
    pad = K // 2
    x = enc_out * enc_out_mask  # (B, T, C)

    def layer(x, w, b, g, be):
        B, T, _ = x.shape
        xp = jnp.pad(x, ((0, 0), (pad, pad), (0, 0)))
        acc = jnp.zeros((B, T, w.shape[-1]), jnp.float32)
        for k in range(K):
            acc = acc + jnp.einsum("btc,cf->btf", xp[:, k:k + T, :], w[k])
        y = jax.nn.relu(acc + b[None, None, :])
        mean = jnp.mean(y, axis=-1, keepdims=True)
        var = jnp.mean((y - mean) ** 2, axis=-1, keepdims=True)
        return (y - mean) / jnp.sqrt(var + LN_EPS) * g + be

    h = layer(x, params["w1"], params["b1"][0], params["g1"][0], params["be1"][0])
    h = layer(h, params["w2"], params["b2"][0], params["g2"][0], params["be2"][0])
    out = jnp.einsum("btf,fp->btp", h, params["wf"]) + params["bf"][0]
    return out * enc_out_mask


def make_params(key, input_size, filter_size, kernel_size, n_predictions):
    ks = jax.random.split(key, 6)
    scale = 0.1
    # conv weights stored as (K, C_in, C_out); PyTorch Conv1d stores (C_out, C_in, K)
    w1 = scale * jax.random.normal(ks[0], (kernel_size, input_size, filter_size), jnp.float32)
    b1 = scale * jax.random.normal(ks[1], (1, filter_size), jnp.float32)
    w2 = scale * jax.random.normal(ks[2], (kernel_size, filter_size, filter_size), jnp.float32)
    b2 = scale * jax.random.normal(ks[3], (1, filter_size), jnp.float32)
    # LayerNorm affine params (PyTorch default init: ones / zeros)
    g1 = jnp.ones((1, filter_size), jnp.float32)
    be1 = jnp.zeros((1, filter_size), jnp.float32)
    g2 = jnp.ones((1, filter_size), jnp.float32)
    be2 = jnp.zeros((1, filter_size), jnp.float32)
    # final Linear
    wf = scale * jax.random.normal(ks[4], (filter_size, n_predictions), jnp.float32)
    bf = scale * jax.random.normal(ks[5], (1, n_predictions), jnp.float32)
    return dict(w1=w1, b1=b1, g1=g1, be1=be1,
                w2=w2, b2=b2, g2=g2, be2=be2,
                wf=wf, bf=bf)


if __name__ == "__main__":
    B, T = 2, 8
    input_size, filter_size, kernel_size, n_predictions = 32, 32, 3, 1

    key = jax.random.PRNGKey(0)
    k_enc, k_par = jax.random.split(key)

    enc_out = jax.random.normal(k_enc, (B, T, input_size), jnp.float32)
    # mask: first few time steps valid per batch element
    lengths = jnp.array([8, 5], jnp.int32)
    enc_out_mask = (jnp.arange(T)[None, :] < lengths[:, None]).astype(jnp.float32)[..., None]

    params = make_params(k_par, input_size, filter_size, kernel_size, n_predictions)

    ref = temporal_predictor_ref(enc_out, enc_out_mask, params)

    # f32 MXU path (exact vs reference)
    out = temporal_predictor(enc_out, enc_out_mask, params)
    out = jax.block_until_ready(out)
    assert out.shape == (B, T, n_predictions)
    assert jnp.max(jnp.abs(out - ref)) < 1e-4, "f32 kernel mismatch vs JAX reference"

    # bf16 MXU inputs (v6e/v7x optimization), f32 accumulation + f32 LayerNorm
    out_bf16 = temporal_predictor(enc_out, enc_out_mask, params,
                                  matmul_dtype=jnp.bfloat16)
    out_bf16 = jax.block_until_ready(out_bf16)
    assert jnp.max(jnp.abs(out_bf16 - ref)) < 5e-2, "bf16 kernel mismatch vs JAX reference"

    print("KERNEL_OK")
</pallas_src>

<mosaic_0001>
module attributes {stable_mosaic.version = 11 : i64} {
  func.func @kernel(%arg0: i32, %arg1: memref<1x32x128xf32, #tpu.memory_space<vmem>>, %arg2: memref<1x1x128xf32, #tpu.memory_space<vmem>>, %arg3: memref<32x96xf32, #tpu.memory_space<vmem>>, %arg4: memref<32x1xf32, #tpu.memory_space<vmem>>, %arg5: memref<32x1xf32, #tpu.memory_space<vmem>>, %arg6: memref<32x1xf32, #tpu.memory_space<vmem>>, %arg7: memref<32x96xf32, #tpu.memory_space<vmem>>, %arg8: memref<32x1xf32, #tpu.memory_space<vmem>>, %arg9: memref<32x1xf32, #tpu.memory_space<vmem>>, %arg10: memref<32x1xf32, #tpu.memory_space<vmem>>, %arg11: memref<32x1xf32, #tpu.memory_space<vmem>>, %arg12: memref<1x1xf32, #tpu.memory_space<vmem>>, %arg13: memref<1x1x128xf32, #tpu.memory_space<vmem>>) attributes {dimension_semantics = [#tpu.dimension_semantics<parallel>], iteration_bounds = array<i64: 2>, scalar_prefetch = 0 : i64, scratch_operands = 0 : i64, tpu.core_type = #tpu.core_type<tc>, window_params = [{transform_indices = @transform_0, window_bounds = array<i64: 1, 32, 128>}, {transform_indices = @transform_1, window_bounds = array<i64: 1, 1, 128>}, {pipeline_mode = #tpu.pipeline_mode<synchronous>, transform_indices = @transform_2, window_bounds = array<i64: 32, 96>}, {pipeline_mode = #tpu.pipeline_mode<synchronous>, transform_indices = @transform_3, window_bounds = array<i64: 32, 1>}, {pipeline_mode = #tpu.pipeline_mode<synchronous>, transform_indices = @transform_4, window_bounds = array<i64: 32, 1>}, {pipeline_mode = #tpu.pipeline_mode<synchronous>, transform_indices = @transform_5, window_bounds = array<i64: 32, 1>}, {pipeline_mode = #tpu.pipeline_mode<synchronous>, transform_indices = @transform_6, window_bounds = array<i64: 32, 96>}, {pipeline_mode = #tpu.pipeline_mode<synchronous>, transform_indices = @transform_7, window_bounds = array<i64: 32, 1>}, {pipeline_mode = #tpu.pipeline_mode<synchronous>, transform_indices = @transform_8, window_bounds = array<i64: 32, 1>}, {pipeline_mode = #tpu.pipeline_mode<synchronous>, transform_indices = @transform_9, window_bounds = array<i64: 32, 1>}, {pipeline_mode = #tpu.pipeline_mode<synchronous>, transform_indices = @transform_10, window_bounds = array<i64: 32, 1>}, {pipeline_mode = #tpu.pipeline_mode<synchronous>, transform_indices = @transform_11, window_bounds = array<i64: 1, 1>}, {transform_indices = @transform_12, window_bounds = array<i64: 1, 1, 128>}]} {
    %c0 = arith.constant 0 : index
    %c0_0 = arith.constant 0 : index
    %c0_1 = arith.constant 0 : index
    %0 = vector.load %arg2[%c0, %c0_0, %c0_1] : memref<1x1x128xf32, #tpu.memory_space<vmem>>, vector<1x1x128xf32>
    %1 = vector.shape_cast %0 : vector<1x1x128xf32> to vector<1x128xf32>
    %c0_2 = arith.constant 0 : index
    %c0_3 = arith.constant 0 : index
    %c0_4 = arith.constant 0 : index
    %2 = vector.load %arg1[%c0_2, %c0_3, %c0_4] : memref<1x32x128xf32, #tpu.memory_space<vmem>>, vector<1x32x128xf32>
    %3 = vector.shape_cast %2 : vector<1x32x128xf32> to vector<32x128xf32>
    %4 = vector.broadcast %1 : vector<1x128xf32> to vector<32x128xf32>
    %5 = arith.mulf %3, %4 : vector<32x128xf32>
    %6 = tpu.iota {dimensions = array<i32: 1>} : vector<1x128xi32>
    %c-1_i32 = arith.constant -1 : i32
    %7 = vector.broadcast %c-1_i32 : i32 to vector<1x128xi32>
    %8 = arith.addi %6, %7 : vector<1x128xi32>
    %c0_i32 = arith.constant 0 : i32
    %9 = vector.broadcast %c0_i32 : i32 to vector<1x128xi32>
    %10 = arith.cmpi sge, %8, %9 : vector<1x128xi32>
    %c-1_i32_5 = arith.constant -1 : i32
    %11 = vector.broadcast %c-1_i32_5 : i32 to vector<1x128xi32>
    %12 = arith.addi %6, %11 : vector<1x128xi32>
    %c8_i32 = arith.constant 8 : i32
    %13 = vector.broadcast %c8_i32 : i32 to vector<1x128xi32>
    %14 = arith.cmpi slt, %12, %13 : vector<1x128xi32>
    %15 = arith.andi %10, %14 : vector<1x128xi1>
    %16 = arith.extui %15 : vector<1x128xi1> to vector<1x128xi32>
    %17 = arith.sitofp %16 : vector<1x128xi32> to vector<1x128xf32>
    %c1_i32 = arith.constant 1 : i32
    %18 = vector.broadcast %c1_i32 : i32 to vector<1x128xi32>
    %19 = arith.addi %6, %18 : vector<1x128xi32>
    %c0_i32_6 = arith.constant 0 : i32
    %20 = vector.broadcast %c0_i32_6 : i32 to vector<1x128xi32>
    %21 = arith.cmpi sge, %19, %20 : vector<1x128xi32>
    %c1_i32_7 = arith.constant 1 : i32
    %22 = vector.broadcast %c1_i32_7 : i32 to vector<1x128xi32>
    %23 = arith.addi %6, %22 : vector<1x128xi32>
    %c8_i32_8 = arith.constant 8 : i32
    %24 = vector.broadcast %c8_i32_8 : i32 to vector<1x128xi32>
    %25 = arith.cmpi slt, %23, %24 : vector<1x128xi32>
    %26 = arith.andi %21, %25 : vector<1x128xi1>
    %27 = arith.extui %26 : vector<1x128xi1> to vector<1x128xi32>
    %28 = arith.sitofp %27 : vector<1x128xi32> to vector<1x128xf32>
    %c1_i32_9 = arith.constant 1 : i32
    %29 = tpu.dynamic_rotate %5 by %c1_i32_9 dim 1 : vector<32x128xf32>, i32 -> vector<32x128xf32>
    %30 = vector.broadcast %17 : vector<1x128xf32> to vector<32x128xf32>
    %31 = arith.mulf %29, %30 : vector<32x128xf32>
    %c127_i32 = arith.constant 127 : i32
    %32 = tpu.dynamic_rotate %5 by %c127_i32 dim 1 : vector<32x128xf32>, i32 -> vector<32x128xf32>
    %33 = vector.broadcast %28 : vector<1x128xf32> to vector<32x128xf32>
    %34 = arith.mulf %32, %33 : vector<32x128xf32>
    %35 = tpu.concatenate %31, %5, %34 in 0 : vector<32x128xf32>, vector<32x128xf32>, vector<32x128xf32> -> vector<96x128xf32>
    %c0_10 = arith.constant 0 : index
    %c0_11 = arith.constant 0 : index
    %36 = vector.load %arg3[%c0_10, %c0_11] : memref<32x96xf32, #tpu.memory_space<vmem>>, vector<32x96xf32>
    %cst = arith.constant dense<0.000000e+00> : vector<32x128xf32>
    %37 = tpu.matmul %36, %35, %cst {dimension_numbers = #tpu.dot_dimension_numbers<[1], [0], [0], [1], [0, 0, 1, 1], [], []>} : vector<32x96xf32>, vector<96x128xf32>, vector<32x128xf32> -> vector<32x128xf32>
    %c0_12 = arith.constant 0 : index
    %c0_13 = arith.constant 0 : index
    %38 = vector.load %arg4[%c0_12, %c0_13] : memref<32x1xf32, #tpu.memory_space<vmem>>, vector<32x1xf32>
    %39 = vector.broadcast %38 : vector<32x1xf32> to vector<32x128xf32>
    %40 = arith.addf %37, %39 : vector<32x128xf32>
    %cst_14 = arith.constant 0.000000e+00 : f32
    %41 = vector.broadcast %cst_14 : f32 to vector<32x128xf32>
    %42 = arith.maximumf %40, %41 : vector<32x128xf32>
    %cst_15 = arith.constant dense<0.000000e+00> : vector<128xf32>
    %43 = vector.multi_reduction <add>, %42, %cst_15 [0] : vector<32x128xf32> to vector<128xf32>
    %44 = vector.shape_cast %43 : vector<128xf32> to vector<1x128xf32>
    %45 = arith.mulf %42, %42 : vector<32x128xf32>
    %cst_16 = arith.constant dense<0.000000e+00> : vector<128xf32>
    %46 = vector.multi_reduction <add>, %45, %cst_16 [0] : vector<32x128xf32> to vector<128xf32>
    %47 = vector.shape_cast %46 : vector<128xf32> to vector<1x128xf32>
    %cst_17 = arith.constant 3.125000e-02 : f32
    %48 = vector.broadcast %cst_17 : f32 to vector<1x128xf32>
    %49 = arith.mulf %44, %48 : vector<1x128xf32>
    %cst_18 = arith.constant 3.125000e-02 : f32
    %50 = vector.broadcast %cst_18 : f32 to vector<1x128xf32>
    %51 = arith.mulf %47, %50 : vector<1x128xf32>
    %52 = arith.mulf %49, %49 : vector<1x128xf32>
    %53 = arith.subf %51, %52 : vector<1x128xf32>
    %cst_19 = arith.constant 0.000000e+00 : f32
    %54 = vector.broadcast %cst_19 : f32 to vector<1x128xf32>
    %55 = arith.maximumf %53, %54 : vector<1x128xf32>
    %cst_20 = arith.constant 9.99999974E-6 : f32
    %56 = vector.broadcast %cst_20 : f32 to vector<1x128xf32>
    %57 = arith.addf %55, %56 : vector<1x128xf32>
    %58 = math.rsqrt %57 : vector<1x128xf32>
    %59 = vector.broadcast %49 : vector<1x128xf32> to vector<32x128xf32>
    %60 = arith.subf %42, %59 : vector<32x128xf32>
    %61 = vector.broadcast %58 : vector<1x128xf32> to vector<32x128xf32>
    %62 = arith.mulf %60, %61 : vector<32x128xf32>
    %c0_21 = arith.constant 0 : index
    %c0_22 = arith.constant 0 : index
    %63 = vector.load %arg5[%c0_21, %c0_22] : memref<32x1xf32, #tpu.memory_space<vmem>>, vector<32x1xf32>
    %64 = vector.broadcast %63 : vector<32x1xf32> to vector<32x128xf32>
    %65 = arith.mulf %62, %64 : vector<32x128xf32>
    %c0_23 = arith.constant 0 : index
    %c0_24 = arith.constant 0 : index
    %66 = vector.load %arg6[%c0_23, %c0_24] : memref<32x1xf32, #tpu.memory_space<vmem>>, vector<32x1xf32>
    %67 = vector.broadcast %66 : vector<32x1xf32> to vector<32x128xf32>
    %68 = arith.addf %65, %67 : vector<32x128xf32>
    %c1_i32_25 = arith.constant 1 : i32
    %69 = tpu.dynamic_rotate %68 by %c1_i32_25 dim 1 : vector<32x128xf32>, i32 -> vector<32x128xf32>
    %70 = vector.broadcast %17 : vector<1x128xf32> to vector<32x128xf32>
    %71 = arith.mulf %69, %70 : vector<32x128xf32>
    %c127_i32_26 = arith.constant 127 : i32
    %72 = tpu.dynamic_rotate %68 by %c127_i32_26 dim 1 : vector<32x128xf32>, i32 -> vector<32x128xf32>
    %73 = vector.broadcast %28 : vector<1x128xf32> to vector<32x128xf32>
    %74 = arith.mulf %72, %73 : vector<32x128xf32>
    %75 = tpu.concatenate %71, %68, %74 in 0 : vector<32x128xf32>, vector<32x128xf32>, vector<32x128xf32> -> vector<96x128xf32>
    %c0_27 = arith.constant 0 : index
    %c0_28 = arith.constant 0 : index
    %76 = vector.load %arg7[%c0_27, %c0_28] : memref<32x96xf32, #tpu.memory_space<vmem>>, vector<32x96xf32>
    %cst_29 = arith.constant dense<0.000000e+00> : vector<32x128xf32>
    %77 = tpu.matmul %76, %75, %cst_29 {dimension_numbers = #tpu.dot_dimension_numbers<[1], [0], [0], [1], [0, 0, 1, 1], [], []>} : vector<32x96xf32>, vector<96x128xf32>, vector<32x128xf32> -> vector<32x128xf32>
    %c0_30 = arith.constant 0 : index
    %c0_31 = arith.constant 0 : index
    %78 = vector.load %arg8[%c0_30, %c0_31] : memref<32x1xf32, #tpu.memory_space<vmem>>, vector<32x1xf32>
    %79 = vector.broadcast %78 : vector<32x1xf32> to vector<32x128xf32>
    %80 = arith.addf %77, %79 : vector<32x128xf32>
    %cst_32 = arith.constant 0.000000e+00 : f32
    %81 = vector.broadcast %cst_32 : f32 to vector<32x128xf32>
    %82 = arith.maximumf %80, %81 : vector<32x128xf32>
    %cst_33 = arith.constant dense<0.000000e+00> : vector<128xf32>
    %83 = vector.multi_reduction <add>, %82, %cst_33 [0] : vector<32x128xf32> to vector<128xf32>
    %84 = vector.shape_cast %83 : vector<128xf32> to vector<1x128xf32>
    %85 = arith.mulf %82, %82 : vector<32x128xf32>
    %cst_34 = arith.constant dense<0.000000e+00> : vector<128xf32>
    %86 = vector.multi_reduction <add>, %85, %cst_34 [0] : vector<32x128xf32> to vector<128xf32>
    %87 = vector.shape_cast %86 : vector<128xf32> to vector<1x128xf32>
    %cst_35 = arith.constant 3.125000e-02 : f32
    %88 = vector.broadcast %cst_35 : f32 to vector<1x128xf32>
    %89 = arith.mulf %84, %88 : vector<1x128xf32>
    %cst_36 = arith.constant 3.125000e-02 : f32
    %90 = vector.broadcast %cst_36 : f32 to vector<1x128xf32>
    %91 = arith.mulf %87, %90 : vector<1x128xf32>
    %92 = arith.mulf %89, %89 : vector<1x128xf32>
    %93 = arith.subf %91, %92 : vector<1x128xf32>
    %cst_37 = arith.constant 0.000000e+00 : f32
    %94 = vector.broadcast %cst_37 : f32 to vector<1x128xf32>
    %95 = arith.maximumf %93, %94 : vector<1x128xf32>
    %cst_38 = arith.constant 9.99999974E-6 : f32
    %96 = vector.broadcast %cst_38 : f32 to vector<1x128xf32>
    %97 = arith.addf %95, %96 : vector<1x128xf32>
    %98 = math.rsqrt %97 : vector<1x128xf32>
    %99 = vector.broadcast %89 : vector<1x128xf32> to vector<32x128xf32>
    %100 = arith.subf %82, %99 : vector<32x128xf32>
    %101 = vector.broadcast %98 : vector<1x128xf32> to vector<32x128xf32>
    %102 = arith.mulf %100, %101 : vector<32x128xf32>
    %c0_39 = arith.constant 0 : index
    %c0_40 = arith.constant 0 : index
    %103 = vector.load %arg9[%c0_39, %c0_40] : memref<32x1xf32, #tpu.memory_space<vmem>>, vector<32x1xf32>
    %104 = vector.broadcast %103 : vector<32x1xf32> to vector<32x128xf32>
    %105 = arith.mulf %102, %104 : vector<32x128xf32>
    %c0_41 = arith.constant 0 : index
    %c0_42 = arith.constant 0 : index
    %106 = vector.load %arg10[%c0_41, %c0_42] : memref<32x1xf32, #tpu.memory_space<vmem>>, vector<32x1xf32>
    %107 = vector.broadcast %106 : vector<32x1xf32> to vector<32x128xf32>
    %108 = arith.addf %105, %107 : vector<32x128xf32>
    %c0_43 = arith.constant 0 : index
    %c0_44 = arith.constant 0 : index
    %109 = vector.load %arg11[%c0_43, %c0_44] : memref<32x1xf32, #tpu.memory_space<vmem>>, vector<32x1xf32>
    %110 = vector.broadcast %109 : vector<32x1xf32> to vector<32x128xf32>
    %111 = arith.mulf %108, %110 : vector<32x128xf32>
    %cst_45 = arith.constant dense<0.000000e+00> : vector<128xf32>
    %112 = vector.multi_reduction <add>, %111, %cst_45 [0] : vector<32x128xf32> to vector<128xf32>
    %113 = vector.shape_cast %112 : vector<128xf32> to vector<1x128xf32>
    %c0_46 = arith.constant 0 : index
    %c0_47 = arith.constant 0 : index
    %114 = vector.load %arg12[%c0_46, %c0_47] : memref<1x1xf32, #tpu.memory_space<vmem>>, vector<1x1xf32>
    %115 = vector.broadcast %114 : vector<1x1xf32> to vector<1x128xf32>
    %116 = arith.addf %113, %115 : vector<1x128xf32>
    %117 = arith.mulf %116, %1 : vector<1x128xf32>
    %c0_48 = arith.constant 0 : index
    %c0_49 = arith.constant 0 : index
    %c0_50 = arith.constant 0 : index
    %118 = vector.load %arg13[%c0_48, %c0_49, %c0_50] : memref<1x1x128xf32, #tpu.memory_space<vmem>>, vector<1x1x128xf32>
    %119 = vector.shape_cast %118 : vector<1x1x128xf32> to vector<1x128xf32>
    %120 = vector.shape_cast %117 : vector<1x128xf32> to vector<1x1x128xf32>
    tpu.vector_store %arg13[%c0_48, %c0_49, %c0_50], %120 {strides = array<i32>} : memref<1x1x128xf32, #tpu.memory_space<vmem>>, vector<1x1x128xf32>,
    return
  }
  func.func @transform_0(%arg0: i32) -> (i32, i32, i32) {
    %c0_i32 = arith.constant 0 : i32
    %c0_i32_0 = arith.constant 0 : i32
    %c0_i32_1 = arith.constant 0 : i32
    return %arg0, %c0_i32, %c0_i32_0 : i32, i32, i32
  }
  func.func @transform_1(%arg0: i32) -> (i32, i32, i32) {
    %c0_i32 = arith.constant 0 : i32
    %c0_i32_0 = arith.constant 0 : i32
    %c0_i32_1 = arith.constant 0 : i32
    return %arg0, %c0_i32, %c0_i32_0 : i32, i32, i32
  }
  func.func @transform_2(%arg0: i32) -> (i32, i32) {
    %c0_i32 = arith.constant 0 : i32
    %c0_i32_0 = arith.constant 0 : i32
    %c0_i32_1 = arith.constant 0 : i32
    return %c0_i32, %c0_i32_0 : i32, i32
  }
  func.func @transform_3(%arg0: i32) -> (i32, i32) {
    %c0_i32 = arith.constant 0 : i32
    %c0_i32_0 = arith.constant 0 : i32
    %c0_i32_1 = arith.constant 0 : i32
    return %c0_i32, %c0_i32_0 : i32, i32
  }
  func.func @transform_4(%arg0: i32) -> (i32, i32) {
    %c0_i32 = arith.constant 0 : i32
    %c0_i32_0 = arith.constant 0 : i32
    %c0_i32_1 = arith.constant 0 : i32
    return %c0_i32, %c0_i32_0 : i32, i32
  }
  func.func @transform_5(%arg0: i32) -> (i32, i32) {
    %c0_i32 = arith.constant 0 : i32
    %c0_i32_0 = arith.constant 0 : i32
    %c0_i32_1 = arith.constant 0 : i32
    return %c0_i32, %c0_i32_0 : i32, i32
  }
  func.func @transform_6(%arg0: i32) -> (i32, i32) {
    %c0_i32 = arith.constant 0 : i32
    %c0_i32_0 = arith.constant 0 : i32
    %c0_i32_1 = arith.constant 0 : i32
    return %c0_i32, %c0_i32_0 : i32, i32
  }
  func.func @transform_7(%arg0: i32) -> (i32, i32) {
    %c0_i32 = arith.constant 0 : i32
    %c0_i32_0 = arith.constant 0 : i32
    %c0_i32_1 = arith.constant 0 : i32
    return %c0_i32, %c0_i32_0 : i32, i32
  }
  func.func @transform_8(%arg0: i32) -> (i32, i32) {
    %c0_i32 = arith.constant 0 : i32
    %c0_i32_0 = arith.constant 0 : i32
    %c0_i32_1 = arith.constant 0 : i32
    return %c0_i32, %c0_i32_0 : i32, i32
  }
  func.func @transform_9(%arg0: i32) -> (i32, i32) {
    %c0_i32 = arith.constant 0 : i32
    %c0_i32_0 = arith.constant 0 : i32
    %c0_i32_1 = arith.constant 0 : i32
    return %c0_i32, %c0_i32_0 : i32, i32
  }
  func.func @transform_10(%arg0: i32) -> (i32, i32) {
    %c0_i32 = arith.constant 0 : i32
    %c0_i32_0 = arith.constant 0 : i32
    %c0_i32_1 = arith.constant 0 : i32
    return %c0_i32, %c0_i32_0 : i32, i32
  }
  func.func @transform_11(%arg0: i32) -> (i32, i32) {
    %c0_i32 = arith.constant 0 : i32
    %c0_i32_0 = arith.constant 0 : i32
    %c0_i32_1 = arith.constant 0 : i32
    return %c0_i32, %c0_i32_0 : i32, i32
  }
  func.func @transform_12(%arg0: i32) -> (i32, i32, i32) {
    %c0_i32 = arith.constant 0 : i32
    %c0_i32_0 = arith.constant 0 : i32
    %c0_i32_1 = arith.constant 0 : i32
    return %arg0, %c0_i32, %c0_i32_0 : i32, i32, i32
  }
}

</mosaic_0001>

<bundles_post_ra>
// kernel: tpu_custom_call.1
= control target key start
LH: loop header
LB: loop body
LE: loop exit
PB: predicated region body
PF: predicated region fallthrough
CT: control target
= control target key end

     0   :  { %s1704_s0 = inlined_call_operand.vmem [shape: f32[2,32,128], index: 0, kind: input, shape index: {}]   ;;  %s1705_s1 = inlined_call_operand.vmem [shape: f32[2,1,128], index: 1, kind: input, shape index: {}]   ;;  %s1706_s2 = inlined_call_operand.vmem [shape: f32[32,96], index: 2, kind: input, shape index: {}]   ;;  %s1707_s3 = inlined_call_operand.vmem [shape: f32[32,1], index: 3, kind: input, shape index: {}]   ;;  %s1708_s4 = inlined_call_operand.vmem [shape: f32[32,1], index: 4, kind: input, shape index: {}]   ;;  %s1709_s5 = inlined_call_operand.vmem [shape: f32[32,1], index: 5, kind: input, shape index: {}]   ;;  %s1710_s6 = inlined_call_operand.vmem [shape: f32[32,96], index: 6, kind: input, shape index: {}]   ;;  %s1711_s7 = inlined_call_operand.vmem [shape: f32[32,1], index: 7, kind: input, shape index: {}]   ;;  %s1712_s8 = inlined_call_operand.vmem [shape: f32[32,1], index: 8, kind: input, shape index: {}]   ;;  %s1713_s9 = inlined_call_operand.vmem [shape: f32[32,1], index: 9, kind: input, shape index: {}]   ;;  %s1714_s10 = inlined_call_operand.vmem [shape: f32[32,1], index: 10, kind: input, shape index: {}]   ;;  %s1715_s11 = inlined_call_operand.<no memory space> [shape: f32[1,1], index: 11, kind: input, shape index: {}]   ;;  %s1716_s12 = inlined_call_operand.hbm [shape: f32[2,1,128], index: 12, kind: output, shape index: {}]  }
   0x1   :  { %1721 = sst [smem:[#allocation6_spill]] %s1704_s0  ;;  %v17_v0 = vstv %s1715_s11 }
   0x2   :  { %18 = vst [vmem:[#allocation2] sm:$0x1] %v17_v0 }
   0x3   :  { %19 = vsyncpa [#allocation4], 0 }
   0x4   :  { %21 = vsyncpa [#allocation4 + $0x1], 0  ;;  %s1422_s23 = smov 0   ;;  %s1424_s24 = smov 0  }
   0x5   :  { %s1426_s25 = smov 0   ;;  %s1428_s26 = smov 0  }
   0x6 LB: > { %s1443_s11 = sadd.s32 4294967295, %s1347_s26   ;;  %s1076_s27 = sadd.s32 4294967294, %s1347_s26   ;;  %s1347_s26 = sphi %s1428_s26, %s1730_s26   ;;  %s1343_s25 = sphi %s1426_s25, %s1729_s25   ;;  %s1339_s24 = sphi %s1424_s24, %s1728_s24   ;;  %s1335_s23 = sphi %s1422_s23, %s1727_s23  }
   0x7   : > { %s1447_s28 = sadd.s32 1, %s1347_s26   ;;  %s296_s29 = sadd.s32 1, %s1343_s25 }
   0x8   : > { %s293_s30 = ssub.s32 %s1347_s26, %s1447_s28  ;;  %p306_p0 = scmp.ne.s32.totalorder %s1343_s25, %s1339_s24 }
   0x9   : > { %p294_p1 = scmp.eq.s32.totalorder %s293_s30, 0  ;;  %p307_p2 = scmp.eq.s32.totalorder %s1443_s11, 1 }
   0xa   : > { %p312_p3 = scmp.ne.s32.totalorder %s1339_s24, %s1335_s23  ;;  %p313_p4 = scmp.eq.s32.totalorder %s1076_s27, 1 }
   0xb   : > { %s1458_s13 = scalar_select %p294_p1, %s1343_s25, %s296_s29  }
   0xc   : > { %p1460_p5 = por %p307_p2, %p306_p0  ;;  %p1464_p6 = por %p313_p4, %p312_p3 }
   0xd   : > { %p1079_p7 = scmp.ge.s32.totalorder %s1347_s26, 1  ;;  %p375_p8 = scmp.lt.s32.totalorder %s1347_s26, 3 }
   0xf   : > { %p376_p9 = pnand %p1079_p7, %p375_p8 }
  0x10   : > { %p419_p10 = scmp.lt.s32.totalorder (!%p376_p9), %s1443_s11, 1  ;;  %v433_v1 = vlaneseq (!%p376_p9)  ;;  %s1724_s0 = sld [smem:[#allocation6_spill]] (!%p376_p9)  ;;  %v480_v16 = vld [vmem:[%s1706_s2] sm:$0xff] (!%p376_p9)  ;;  %vm508_vm0 = vcmask (!%p376_p9), 785408   ;;  %v485_v17 = vld [vmem:[%s1707_s3 + $0x8] sm:$0xff] (!%p376_p9)  ;;  %v1351_v19 = vmov (!%p376_p9), 0  }
  0x11   : > { %379 = sbr.rel (%p376_p9) target bundleno = 888 (0x378), region = 68  ;;  %s1719_s29 = smov (!%p376_p9), 1   ;;  %1152 = vmatprep.mubr.msk.f32.mxu0 (!%p376_p9), %vm508_vm0, %v480_v16  ;;  %v484_v18 = vld [vmem:[%s1707_s3] sm:$0xff] (!%p376_p9)  ;;  %1280 = vset.pattern.permute.xlu1 (!%p376_p9), %v1351_v19  ;;  %v486_v20 = vld [vmem:[%s1707_s3 + $0x10] sm:$0xff] (!%p376_p9)  ;;  %v487_v21 = vld [vmem:[%s1707_s3 + $0x18] sm:$0xff] (!%p376_p9)  ;;  %v1352_v34 = vmov (!%p376_p9), 0.0  }
  0x12   : > { %v1472_v2 = vshrl.u32 (!%p376_p9), %v433_v1, 7  ;;  %s1717_s30 = smov (!%p376_p9), 127   ;;  %1279 = vset.pattern.permute.xlu0 (!%p376_p9), %v1351_v19  ;;  %v647_v22 = vld [vmem:[%s1708_s4] sm:$0xff] (!%p376_p9)  ;;  %v648_v23 = vld [vmem:[%s1708_s4 + $0x8] sm:$0xff] (!%p376_p9)  ;;  %v649_v26 = vld [vmem:[%s1708_s4 + $0x10] sm:$0xff] (!%p376_p9)  ;;  %v443_v30 = vand.u32 (!%p376_p9), 127, %v433_v1 }
  0x13   : > { %v675_v24 = vld [vmem:[%s1709_s5] sm:$0xff] (!%p376_p9)  ;;  %v676_v25 = vld [vmem:[%s1709_s5 + $0x8] sm:$0xff] (!%p376_p9)  ;;  %v650_v27 = vld [vmem:[%s1708_s4 + $0x18] sm:$0xff] (!%p376_p9)  ;;  %s1726_s21 = smov (!%p376_p9), 127  }
  0x14   : > { %v435_v3 = vsub.s32 (!%p376_p9), 0, %v1472_v2  ;;  %v677_v28 = vld [vmem:[%s1709_s5 + $0x10] sm:$0xff] (!%p376_p9)  ;;  %v678_v29 = vld [vmem:[%s1709_s5 + $0x18] sm:$0xff] (!%p376_p9)  ;;  %v444_v31 = vadd.s32 (!%p376_p9), 4294967295, %v443_v30  ;;  %v450_v38 = vadd.s32 (!%p376_p9), 1, %v443_v30  ;;  %v481_v56 = vld [vmem:[%s1706_s2 + $0x8] sm:$0xff] (!%p376_p9) }
  0x15   : > { %v482_v57 = vld [vmem:[%s1706_s2 + $0x10] sm:$0xff] (!%p376_p9)  ;;  %v483_v58 = vld [vmem:[%s1706_s2 + $0x18] sm:$0xff] (!%p376_p9) }
  0x16   : > { %vm445_vm1 = vcmp.ge.s32.totalorder (!%p376_p9), %v444_v31, 0  ;;  %vm446_vm2 = vcmp.lt.s32.totalorder (!%p376_p9), %v444_v31, 8  ;;  %vm452_vm4 = vcmp.lt.s32.totalorder (!%p376_p9), %v450_v38, 8 }
  0x17   : > { %vm447_vm3 = vmand (!%p376_p9), %vm445_vm1, %vm446_vm2  ;;  %v1544_v47 = vsel (!%p376_p9), %vm452_vm4, 1.0, %v1352_v34 }
  0x18   : > { %s420_s16 = scalar_select %p419_p10, %s1443_s11, 1  ;;  %v1538_v35 = vsel %vm447_vm3, 1.0, %v1352_v34 }
  0x1a   : > { %s1095_s17 = sshll.u32 %s420_s16, 5  ;;  %s426_s20 = scalar_lea.vmem %s1705_s1, %s420_s16 }
  0x1b   : > { %s423_s27 = scalar_lea.vmem %s1724_s0, %s1095_s17  ;;  %v1481_v4 = vld [vmem:[%s426_s20] sm:$0x1]  ;;  %s1725_s20 = smov 1  }
  0x1c   : > { %v430_v5 = vld [vmem:[%s423_s27 + $0x10] sm:$0xff]  ;;  %v436_v6 = vrot.slane %v1481_v4, %v435_v3  ;;  %v428_v7 = vld [vmem:[%s423_s27] sm:$0xff]  ;;  %v431_v8 = vld [vmem:[%s423_s27 + $0x18] sm:$0xff] }
  0x1d   : > { %v429_v9 = vld [vmem:[%s423_s27 + $0x8] sm:$0xff] }
  0x1e   : > { %v440_v10 = vmul.f32 %v436_v6, %v430_v5  ;;  %v438_v11 = vmul.f32 %v436_v6, %v428_v7  ;;  %v439_v12 = vmul.f32 %v436_v6, %v429_v9  ;;  %v441_v13 = vmul.f32 %v436_v6, %v431_v8 }
  0x20   : > { %460 = vrot.lane.b32.xlu1 %v440_v10, %s1719_s29  ;;  %456 = vrot.lane.b32.xlu0 %v438_v11, %s1719_s29  ;;  %v1488_v14 = vpack.c.bf16 %v439_v12, %v438_v11  ;;  %v1492_v15 = vpack.c.bf16 %v441_v13, %v440_v10 }
  0x24   : > { %462 = vrot.lane.b32.xlu1 %v441_v13, %s1719_s29  ;;  %458 = vrot.lane.b32.xlu0 %v439_v12, %s1719_s29  ;;  %s417_s29 = sand.u32 1, %s1339_s24  }
  0x25   : > { %s418_s22 = scalar_lea.vmem [#allocation3], %s417_s29  ;;  %s1000_s19 = scalar_lea.sflag [#allocation4], %s417_s29 }
  0x26   : > { %s1012_s27 = sshll.u32 %s418_s22, 4  ;;  %s1664_s27 = int_to_ptr.vmem [resolvable:$true] %s1012_s27 }
  0x28   : > { %470 = vrot.lane.b32.xlu1 %v439_v12, %s1717_s30  ;;  %468 = vrot.lane.b32.xlu0 %v438_v11, %s1717_s30 }
  0x2c   : > { %474 = vrot.lane.b32.xlu1 %v441_v13, %s1717_s30  ;;  %472 = vrot.lane.b32.xlu0 %v440_v10, %s1717_s30  ;;  %s1092_s30 = sshll.u32 %s1443_s11, 4  ;;  %s1353_s11 = smov [#allocation3]  }
  0x2d   : > { %s1662_s18 = scalar_lea.hbm %s1716_s12, %s1092_s30 }
  0x30   : > { %495 = vperm.xlu1 %1280, %v485_v17   ;;  %490 = vperm.xlu0 %1279, %v484_v18  }
  0x34   : > { %500 = vperm.xlu1 %1280, %v486_v20   ;;  %505 = vperm.xlu0 %1279, %v487_v21  }
  0x38   : > { %653 = vperm.xlu1 %1280, %v647_v22   ;;  %658 = vperm.xlu0 %1279, %v648_v23  }
  0x3c   : > { %681 = vperm.xlu1 %1280, %v675_v24   ;;  %686 = vperm.xlu0 %1279, %v676_v25  }
  0x40   : > { %663 = vperm.xlu1 %1280, %v649_v26   ;;  %668 = vperm.xlu0 %1279, %v650_v27  }
  0x44   : > { %691 = vperm.xlu1 %1280, %v677_v28   ;;  %696 = vperm.xlu0 %1279, %v678_v29  }
  0x92   : > { %v461_v32 = vpop.permute.xlu1 %460  ;;  %v457_v33 = vpop.permute.xlu0 %456 }
  0x93   : > { %v466_v39 = vmul.f32 %v1538_v35, %v461_v32  ;;  %v464_v40 = vmul.f32 %v1538_v35, %v457_v33 }
  0x96   : > { %v463_v36 = vpop.permute.xlu1 %462  ;;  %v459_v37 = vpop.permute.xlu0 %458 }
  0x97   : > { %v467_v41 = vmul.f32 %v1538_v35, %v463_v36  ;;  %v465_v42 = vmul.f32 %v1538_v35, %v459_v37 }
  0x99   : > { %v1188_v43 = vpack.c.bf16 %v465_v42, %v464_v40  ;;  %v1192_v44 = vpack.c.bf16 %v467_v41, %v466_v39 }
  0x9a   : > { %v471_v45 = vpop.permute.xlu1 %470  ;;  %v469_v46 = vpop.permute.xlu0 %468 }
  0x9b   : > { %1189 = vmatprep.subr.bf16.mxu0 %v1188_v43  ;;  %v477_v48 = vmul.f32 %v1544_v47, %v471_v45  ;;  %v476_v49 = vmul.f32 %v1544_v47, %v469_v46 }
  0x9c   : > { %1191 = vmatpush3.bf16.msra.mxu0 %v1188_v43 }
  0x9d   : > { %1193 = vmatprep.subr.bf16.mxu0 %v1192_v44  ;;  %v1204_v52 = vpack.c.bf16 %v477_v48, %v476_v49 }
  0x9e   : > { %v475_v50 = vpop.permute.xlu1 %474  ;;  %v473_v51 = vpop.permute.xlu0 %472 }
  0x9f   : > { %v479_v53 = vmul.f32 %v1544_v47, %v475_v50  ;;  %v478_v54 = vmul.f32 %v1544_v47, %v473_v51 }
  0xa0   : > { %1195 = vmatpush3.bf16.msra.mxu0 %v1192_v44 }
  0xa1   : > { %1197 = vmatprep.subr.bf16.mxu0 %v1488_v14  ;;  %v1208_v55 = vpack.c.bf16 %v479_v53, %v478_v54 }
  0xa4   : > { %1199 = vmatpush3.bf16.msra.mxu0 %v1488_v14 }
  0xa5   : > { %1201 = vmatprep.subr.bf16.mxu0 %v1492_v15 }
  0xa8   : > { %1203 = vmatpush3.bf16.msra.mxu0 %v1492_v15 }
  0xa9   : > { %1205 = vmatprep.subr.bf16.mxu0 %v1204_v52 }
  0xac   : > { %1207 = vmatpush3.bf16.msra.mxu0 %v1204_v52 }
  0xad   : > { %1209 = vmatprep.subr.bf16.mxu0 %v1208_v55 }
  0xaf   : > { %v491_v59 = vpop.permute.xlu0 %490  ;;  %v496_v60 = vpop.permute.xlu1 %495 }
  0xb0   : > { %1211 = vmatpush3.bf16.msra.mxu0 %v1208_v55 }
  0xb3   : > { %1153 = vmatmul.mubr.msk.f32.vlgmr.msra.gmra.mrb[0].mxu0 %vm508_vm0, %v481_v56  ;;  %v506_v5 = vpop.permute.xlu0 %505  ;;  %v501_v8 = vpop.permute.xlu1 %500 }
  0xb4   : > { %1155 = vmatprep.mubr.msk.f32.mxu0 %vm508_vm0, %v482_v57 }
  0xb7   : > { %1156 = vmatmul.mubr.msk.f32.gmra.mrb[2].mxu0 %vm508_vm0, %v483_v58  ;;  %v654_v45 = vpop.permute.xlu1 %653  ;;  %v659_v46 = vpop.permute.xlu0 %658 }
  0xbb   : > { %v682_v50 = vpop.permute.xlu1 %681  ;;  %v687_v51 = vpop.permute.xlu0 %686 }
  0xbf   : > { %v664_v52 = vpop.permute.xlu1 %663  ;;  %v669_v53 = vpop.permute.xlu0 %668 }
 0x186   : > { %v1154_v61 = vpop.f32.mrb[0].mxu0 }
 0x187   : > { %v593_v62 = vadd.f32 %v1154_v61, %v496_v60  ;;  %v587_v63 = vpop.f32.mrb[1].mxu0 }
 0x188   : > { %v588_v0 = vadd.f32 %v587_v63, %v491_v59  ;;  %v692_v63 = vpop.permute.xlu1 %691 }
 0x189   : > { %v607_v1 = vmax.f32 %v593_v62, 0.0 }
 0x18a   : > { %v606_v6 = vmax.f32 %v588_v0, 0.0  ;;  %v1157_v7 = vpop.f32.mrb[2].mxu0  ;;  %v697_v0 = vpop.permute.xlu0 %696 }
 0x18b   : > { %v620_v9 = vmul.f32 %v607_v1, %v607_v1  ;;  %v603_v10 = vadd.f32 %v1157_v7, %v506_v5  ;;  %v597_v11 = vpop.f32.mrb[3].mxu0 }
 0x18c   : > { %v610_v12 = vadd.f32 %v607_v1, %v606_v6  ;;  %v619_v13 = vmul.f32 %v606_v6, %v606_v6  ;;  %v598_v14 = vadd.f32 %v597_v11, %v501_v8  ;;  %v732_v11 = vld [vmem:[%s1711_s7 + $0x8] sm:$0xff] }
 0x18d   : > { %v609_v16 = vmax.f32 %v603_v10, 0.0  ;;  %v727_v10 = vld [vmem:[%s1710_s6] sm:$0xff] }
 0x18e   : > { %v623_v15 = vadd.f32 %v620_v9, %v619_v13  ;;  %v608_v17 = vmax.f32 %v598_v14, 0.0  ;;  %1182 = vmatprep.mubr.msk.f32.mxu1 %vm508_vm0, %v727_v10  ;;  %v734_v13 = vld [vmem:[%s1711_s7 + $0x18] sm:$0xff]  ;;  %v733_v14 = vld [vmem:[%s1711_s7 + $0x10] sm:$0xff] }
 0x18f   : > { %v622_v20 = vmul.f32 %v609_v16, %v609_v16 }
 0x190   : > { %v611_v18 = vadd.f32 %v610_v12, %v608_v17  ;;  %v621_v19 = vmul.f32 %v608_v17, %v608_v17  ;;  %v731_v12 = vld [vmem:[%s1711_s7] sm:$0xff] }
 0x192   : > { %v612_v21 = vadd.f32 %v611_v18, %v609_v16  ;;  %v624_v22 = vadd.f32 %v623_v15, %v621_v19  ;;  %v894_v15 = vld [vmem:[%s1712_s8 + $0x8] sm:$0xff]  ;;  %v895_v18 = vld [vmem:[%s1712_s8 + $0x10] sm:$0xff]  ;;  %v896_v19 = vld [vmem:[%s1712_s8 + $0x18] sm:$0xff] }
 0x194   : > { %v613_v23 = vrot.slane %v612_v21, 4  ;;  %v625_v24 = vadd.f32 %v624_v22, %v622_v20  ;;  %v922_v20 = vld [vmem:[%s1713_s9 + $0x8] sm:$0xff]  ;;  %v923_v22 = vld [vmem:[%s1713_s9 + $0x10] sm:$0xff] }
 0x196   : > { %v614_v25 = vadd.f32 %v613_v23, %v612_v21  ;;  %v626_v26 = vrot.slane %v625_v24, 4  ;;  %v949_v21 = vld [vmem:[%s1714_s10] sm:$0xff]  ;;  %v924_v23 = vld [vmem:[%s1713_s9 + $0x18] sm:$0xff] }
 0x198   : > { %v615_v27 = vrot.slane %v614_v25, 2  ;;  %v627_v28 = vadd.f32 %v626_v26, %v625_v24  ;;  %v950_v24 = vld [vmem:[%s1714_s10 + $0x8] sm:$0xff]  ;;  %v951_v26 = vld [vmem:[%s1714_s10 + $0x10] sm:$0xff] }
 0x19a   : > { %v616_v29 = vadd.f32 %v615_v27, %v614_v25  ;;  %v628_v30 = vrot.slane %v627_v28, 2  ;;  %v952_v25 = vld [vmem:[%s1714_s10 + $0x18] sm:$0xff]  ;;  %v986_v27 = vld [vmem:[#allocation2] sm:$0x1] }
 0x19c   : > { %v617_v31 = vrot.slane %v616_v29, 1  ;;  %v629_v32 = vadd.f32 %v628_v30, %v627_v28 }
 0x19e   : > { %v618_v33 = vadd.f32 %v617_v31, %v616_v29  ;;  %v630_v34 = vrot.slane %v629_v32, 1 }
 0x1a0   : > { %v631_v36 = vadd.f32 %v630_v34, %v629_v32  ;;  %v632_v37 = vmul.f32 0.03125, %v618_v33 }
 0x1a2   : > { %v633_v38 = vmul.f32 0.03125, %v631_v36  ;;  %v634_v39 = vmul.f32 %v632_v37, %v632_v37  ;;  %v641_v40 = vsub.f32 %v608_v17, %v632_v37  ;;  %v640_v41 = vsub.f32 %v607_v1, %v632_v37  ;;  %v921_v17 = vld [vmem:[%s1713_s9] sm:$0xff] }
 0x1a3   : > { %v639_v42 = vsub.f32 %v606_v6, %v632_v37  ;;  %v642_v43 = vsub.f32 %v609_v16, %v632_v37  ;;  %v893_v16 = vld [vmem:[%s1712_s8] sm:$0xff] }
 0x1a4   : > { %v635_v44 = vsub.f32 %v633_v38, %v634_v39 }
 0x1a6   : > { %v636_v48 = vmax.f32 %v635_v44, 0.0 }
 0x1a8   : > { %v637_v49 = vadd.f32 1e-05, %v636_v48 }
 0x1aa   : > { %1281 = vrsqrt.f32 %v637_v49  ;;  %v728_v49 = vld [vmem:[%s1710_s6 + $0x8] sm:$0xff] }
 0x1b4   : > { %v1282_v54 = vpop.eup %1281 }
 0x1b5   : > { %v645_v55 = vmul.f32 %v1282_v54, %v641_v40  ;;  %v644_v56 = vmul.f32 %v1282_v54, %v640_v41  ;;  %v643_v57 = vmul.f32 %v1282_v54, %v639_v42  ;;  %v646_v58 = vmul.f32 %v1282_v54, %v642_v43 }
 0x1b7   : > { %v672_v59 = vmul.f32 %v659_v46, %v644_v56  ;;  %v671_v60 = vmul.f32 %v654_v45, %v643_v57  ;;  %v674_v61 = vmul.f32 %v669_v53, %v646_v58  ;;  %v673_v62 = vmul.f32 %v664_v52, %v645_v55 }
 0x1b9   : > { %v700_v1 = vadd.f32 %v687_v51, %v672_v59  ;;  %v699_v5 = vadd.f32 %v682_v50, %v671_v60  ;;  %v702_v6 = vadd.f32 %v697_v0, %v674_v61  ;;  %v701_v7 = vadd.f32 %v692_v63, %v673_v62  ;;  %v729_v50 = vld [vmem:[%s1710_s6 + $0x10] sm:$0xff] }
 0x1bb   : > { %705 = vrot.lane.b32.xlu0 %v700_v1, %s1725_s20  ;;  %703 = vrot.lane.b32.xlu1 %v699_v5, %s1725_s20  ;;  %v1568_v8 = vpack.c.bf16 %v700_v1, %v699_v5  ;;  %v1570_v9 = vpack.c.bf16 %v702_v6, %v701_v7 }
 0x1bf   : > { %709 = vrot.lane.b32.xlu0 %v702_v6, %s1725_s20  ;;  %707 = vrot.lane.b32.xlu1 %v701_v7, %s1725_s20  ;;  %s1285_s20 = scalar_lea.vmem %s1664_s27, 16 }
 0x1c0   : > { %p1286_p11 = scmp.ne.s32.totalorder %s1664_s27, %s1285_s20 }
 0x1c2   : > { %p1287_p12 = pnand %p1286_p11, %p1460_p5 }
 0x1c3   : > { %717 = vrot.lane.b32.xlu0 %v700_v1, %s1726_s21  ;;  %715 = vrot.lane.b32.xlu1 %v699_v5, %s1726_s21 }
 0x1c4   : > { %p1288_p13 = pneg %p1287_p12 }
 0x1c7   : > { %721 = vrot.lane.b32.xlu0 %v702_v6, %s1726_s21  ;;  %719 = vrot.lane.b32.xlu1 %v701_v7, %s1726_s21  ;;  %s1289_s21 = sshll.u32 %s1353_s11, 4  ;;  %s1290_s21 = int_to_ptr.vmem [resolvable:$false] %s1289_s21 }
 0x1c8   : > { %s1291_s0 = scalar_lea.vmem %s1290_s21, 32  ;;  %p1292_p0 = scmp.lt.s32.totalorder %s1664_s27, %s1290_s21 }
 0x1c9   : > { %p1293_p1 = scmp.lt.s32.totalorder %s1291_s0, %s1285_s20 }
 0x1cb   : > { %742 = vperm.xlu0 %1279, %v732_v11   ;;  %737 = vperm.xlu1 %1280, %v731_v12   ;;  %p1294_p2 = por %p1293_p1, %p1292_p0 }
 0x1cd   : > { %p1295_p3 = pnand %p1294_p2, %p1288_p13 }
 0x1cf   : > { %752 = vperm.xlu0 %1279, %v734_v13   ;;  %747 = vperm.xlu1 %1280, %v733_v14  }
 0x1d3   : > { %904 = vperm.xlu0 %1279, %v894_v15   ;;  %899 = vperm.xlu1 %1280, %v893_v16  }
 0x1d7   : > { %927 = vperm.xlu0 %1279, %v921_v17   ;;  %909 = vperm.xlu1 %1280, %v895_v18  }
 0x1db   : > { %914 = vperm.xlu0 %1279, %v896_v19   ;;  %932 = vperm.xlu1 %1280, %v922_v20  }
 0x1df   : > { %955 = vperm.xlu0 %1279, %v949_v21   ;;  %937 = vperm.xlu1 %1280, %v923_v22  }
 0x1e3   : > { %942 = vperm.xlu0 %1279, %v924_v23   ;;  %960 = vperm.xlu1 %1280, %v950_v24  }
 0x1e7   : > { %970 = vperm.xlu0 %1279, %v952_v25   ;;  %965 = vperm.xlu1 %1280, %v951_v26  }
 0x1eb   : > { %989 = vperm.xlu1 %1280, %v986_v27  }
 0x22d   : > { %v706_v28 = vpop.permute.xlu0 %705  ;;  %v704_v29 = vpop.permute.xlu1 %703 }
 0x22e   : > { %v712_v30 = vmul.f32 %v1538_v35, %v706_v28  ;;  %v711_v31 = vmul.f32 %v1538_v35, %v704_v29 }
 0x230   : > { %v1212_v32 = vpack.c.bf16 %v712_v30, %v711_v31 }
 0x231   : > { %v710_v33 = vpop.permute.xlu0 %709  ;;  %v708_v34 = vpop.permute.xlu1 %707 }
 0x232   : > { %v714_v36 = vmul.f32 %v1538_v35, %v710_v33  ;;  %v713_v37 = vmul.f32 %v1538_v35, %v708_v34  ;;  %1213 = vmatprep.subr.bf16.mxu1 %v1212_v32 }
 0x233   : > { %1215 = vmatpush3.bf16.msra.mxu1 %v1212_v32 }
 0x234   : > { %v1216_v38 = vpack.c.bf16 %v714_v36, %v713_v37 }
 0x235   : > { %v718_v39 = vpop.permute.xlu0 %717  ;;  %v716_v40 = vpop.permute.xlu1 %715 }
 0x236   : > { %1217 = vmatprep.subr.bf16.mxu1 %v1216_v38  ;;  %v724_v41 = vmul.f32 %v1544_v47, %v718_v39  ;;  %v723_v42 = vmul.f32 %v1544_v47, %v716_v40 }
 0x237   : > { %1219 = vmatpush3.bf16.msra.mxu1 %v1216_v38 }
 0x238   : > { %1221 = vmatprep.subr.bf16.mxu1 %v1568_v8  ;;  %v1228_v35 = vpack.c.bf16 %v724_v41, %v723_v42 }
 0x239   : > { %v722_v43 = vpop.permute.xlu0 %721  ;;  %v720_v44 = vpop.permute.xlu1 %719 }
 0x23a   : > { %v726_v45 = vmul.f32 %v1544_v47, %v722_v43  ;;  %v725_v46 = vmul.f32 %v1544_v47, %v720_v44  ;;  %v730_v47 = vld [vmem:[%s1710_s6 + $0x18] sm:$0xff] }
 0x23b   : > { %1223 = vmatpush3.bf16.msra.mxu1 %v1568_v8 }
 0x23c   : > { %1225 = vmatprep.subr.bf16.mxu1 %v1570_v9  ;;  %v1232_v48 = vpack.c.bf16 %v726_v45, %v725_v46 }
 0x23f   : > { %1227 = vmatpush3.bf16.msra.mxu1 %v1570_v9 }
 0x240   : > { %1229 = vmatprep.subr.bf16.mxu1 %v1228_v35 }
 0x243   : > { %1231 = vmatpush3.bf16.msra.mxu1 %v1228_v35 }
 0x244   : > { %1233 = vmatprep.subr.bf16.mxu1 %v1232_v48 }
 0x247   : > { %1235 = vmatpush3.bf16.msra.mxu1 %v1232_v48 }
 0x24a   : > { %1183 = vmatmul.mubr.msk.f32.vlgmr.msra.gmra.mrb[0].mxu1 %vm508_vm0, %v728_v49  ;;  %v743_v51 = vpop.permute.xlu0 %742  ;;  %v738_v52 = vpop.permute.xlu1 %737 }
 0x24b   : > { %1185 = vmatprep.mubr.msk.f32.mxu1 %vm508_vm0, %v729_v50 }
 0x24e   : > { %1186 = vmatmul.mubr.msk.f32.gmra.mrb[2].mxu1 %vm508_vm0, %v730_v47  ;;  %v753_v58 = vpop.permute.xlu0 %752  ;;  %v748_v61 = vpop.permute.xlu1 %747 }
 0x252   : > { %v900_v25 = vpop.permute.xlu1 %899  ;;  %v905_v28 = vpop.permute.xlu0 %904 }
 0x256   : > { %v910_v38 = vpop.permute.xlu1 %909  ;;  %v928_v40 = vpop.permute.xlu0 %927 }
 0x25a   : > { %v933_v43 = vpop.permute.xlu1 %932  ;;  %v915_v44 = vpop.permute.xlu0 %914 }
 0x25e   : > { %v938_v35 = vpop.permute.xlu1 %937  ;;  %v956_v45 = vpop.permute.xlu0 %955 }
 0x31d   : > { %v1184_v53 = vpop.f32.mrb[0].mxu1 }
 0x31e   : > { %v839_v54 = vadd.f32 %v1184_v53, %v743_v51  ;;  %v833_v55 = vpop.f32.mrb[1].mxu1  ;;  %v961_v51 = vpop.permute.xlu1 %960 }
 0x31f   : > { %v834_v56 = vadd.f32 %v833_v55, %v738_v52 }
 0x320   : > { %v853_v57 = vmax.f32 %v839_v54, 0.0 }
 0x321   : > { %v852_v59 = vmax.f32 %v834_v56, 0.0  ;;  %v1187_v60 = vpop.f32.mrb[2].mxu1  ;;  %v943_v56 = vpop.permute.xlu0 %942 }
 0x322   : > { %v866_v62 = vmul.f32 %v853_v57, %v853_v57  ;;  %v849_v63 = vadd.f32 %v1187_v60, %v753_v58  ;;  %v843_v0 = vpop.f32.mrb[3].mxu1 }
 0x323   : > { %v856_v1 = vadd.f32 %v853_v57, %v852_v59  ;;  %v865_v5 = vmul.f32 %v852_v59, %v852_v59  ;;  %v844_v6 = vadd.f32 %v843_v0, %v748_v61 }
 0x324   : > { %v855_v8 = vmax.f32 %v849_v63, 0.0  ;;  %v966_v63 = vpop.permute.xlu1 %965 }
 0x325   : > { %v869_v7 = vadd.f32 %v866_v62, %v865_v5  ;;  %v854_v9 = vmax.f32 %v844_v6, 0.0  ;;  %v971_v5 = vpop.permute.xlu0 %970 }
 0x326   : > { %v868_v12 = vmul.f32 %v855_v8, %v855_v8 }
 0x327   : > { %v857_v10 = vadd.f32 %v856_v1, %v854_v9  ;;  %v867_v11 = vmul.f32 %v854_v9, %v854_v9 }
 0x329   : > { %v858_v13 = vadd.f32 %v857_v10, %v855_v8  ;;  %v870_v14 = vadd.f32 %v869_v7, %v867_v11 }
 0x32b   : > { %v859_v15 = vrot.slane %v858_v13, 4  ;;  %v871_v16 = vadd.f32 %v870_v14, %v868_v12 }
 0x32d   : > { %v860_v17 = vadd.f32 %v859_v15, %v858_v13  ;;  %v872_v18 = vrot.slane %v871_v16, 4  ;;  %v990_v13 = vpop.permute.xlu1 %989 }
 0x32e   : > { %v995_v15 = vrot.slane %v990_v13, %v435_v3 }
 0x32f   : > { %v861_v19 = vrot.slane %v860_v17, 2  ;;  %v873_v20 = vadd.f32 %v872_v18, %v871_v16 }
 0x331   : > { %v862_v21 = vadd.f32 %v861_v19, %v860_v17  ;;  %v874_v22 = vrot.slane %v873_v20, 2 }
 0x333   : > { %v863_v23 = vrot.slane %v862_v21, 1  ;;  %v875_v24 = vadd.f32 %v874_v22, %v873_v20 }
 0x335   : > { %v864_v26 = vadd.f32 %v863_v23, %v862_v21  ;;  %v876_v27 = vrot.slane %v875_v24, 1 }
 0x337   : > { %v877_v29 = vadd.f32 %v876_v27, %v875_v24  ;;  %v878_v30 = vmul.f32 0.03125, %v864_v26 }
 0x339   : > { %v879_v31 = vmul.f32 0.03125, %v877_v29  ;;  %v880_v32 = vmul.f32 %v878_v30, %v878_v30  ;;  %v885_v33 = vsub.f32 %v852_v59, %v878_v30  ;;  %v886_v34 = vsub.f32 %v853_v57, %v878_v30 }
 0x33a   : > { %v887_v36 = vsub.f32 %v854_v9, %v878_v30  ;;  %v888_v37 = vsub.f32 %v855_v8, %v878_v30 }
 0x33b   : > { %v881_v39 = vsub.f32 %v879_v31, %v880_v32 }
 0x33d   : > { %v882_v41 = vmax.f32 %v881_v39, 0.0 }
 0x33f   : > { %v883_v42 = vadd.f32 1e-05, %v882_v41 }
 0x341   : > { %1283 = vrsqrt.f32 %v883_v42 }
 0x34b   : > { %v1284_v46 = vpop.eup %1283 }
 0x34c   : > { %v889_v48 = vmul.f32 %v1284_v46, %v885_v33  ;;  %v890_v49 = vmul.f32 %v1284_v46, %v886_v34  ;;  %v891_v50 = vmul.f32 %v1284_v46, %v887_v36  ;;  %v892_v47 = vmul.f32 %v1284_v46, %v888_v37 }
 0x34e   : > { %v917_v52 = vmul.f32 %v900_v25, %v889_v48  ;;  %v918_v53 = vmul.f32 %v905_v28, %v890_v49  ;;  %v919_v54 = vmul.f32 %v910_v38, %v891_v50  ;;  %v920_v55 = vmul.f32 %v915_v44, %v892_v47 }
 0x350   : > { %v945_v57 = vadd.f32 %v928_v40, %v917_v52  ;;  %v946_v58 = vadd.f32 %v933_v43, %v918_v53  ;;  %v947_v59 = vadd.f32 %v938_v35, %v919_v54  ;;  %v948_v62 = vadd.f32 %v943_v56, %v920_v55 }
 0x352   : > { %v973_v60 = vmul.f32 %v956_v45, %v945_v57  ;;  %v974_v61 = vmul.f32 %v961_v51, %v946_v58  ;;  %v975_v0 = vmul.f32 %v966_v63, %v947_v59  ;;  %v976_v7 = vmul.f32 %v971_v5, %v948_v62 }
 0x354   : > { %v977_v1 = vadd.f32 %v974_v61, %v973_v60 }
 0x356   : > { %v978_v6 = vadd.f32 %v977_v1, %v975_v0 }
 0x358   : > { %v979_v8 = vadd.f32 %v978_v6, %v976_v7 }
 0x35a   : > { %v980_v9 = vrot.slane %v979_v8, 4 }
 0x35c   : > { %v981_v10 = vadd.f32 %v980_v9, %v979_v8 }
 0x35e   : > { %v982_v11 = vrot.slane %v981_v10, 2 }
 0x360   : > { %v983_v12 = vadd.f32 %v982_v11, %v981_v10 }
 0x362   : > { %v984_v14 = vrot.slane %v983_v12, 1 }
 0x364   : > { %v985_v16 = vadd.f32 %v984_v14, %v983_v12 }
 0x366   : > { %v996_v17 = vadd.f32 %v995_v15, %v985_v16 }
 0x368   : > { %v997_v18 = vmul.f32 %v996_v17, %v1481_v4 }
 0x36a   : > { %998 = vst [vmem:[%s418_s22] sm:$0x1] %v997_v18 }
 0x36b   : > { %1298 = shalt.err (!%p1295_p3)
}
 0x36c   : > { %s1299_s29 = scalar_lea.hbm %s1662_s18, 16  ;;  %s1303_s16 = scalar_lea.hbm %s1716_s12, 32 }
 0x36d   : > { %p1300_p4 = scmp.ne.s32.totalorder %s1662_s18, %s1299_s29  ;;  %p1304_p9 = scmp.lt.u32.totalorder %s1662_s18, %s1716_s12 }
 0x36e   : > { %p1305_p10 = scmp.lt.u32.totalorder %s1303_s16, %s1299_s29  ;;  %p1307_p12 = scmp.lt.u32.totalorder %s1299_s29, %s1662_s18 }
 0x36f   : > { %p1301_p7 = pnand %p1300_p4, %p1460_p5 }
 0x370   : > { %p1306_p11 = por %p1305_p10, %p1304_p9 }
 0x371   : > { %p1302_p8 = pneg %p1301_p7 }
 0x372   : > { %p1308_p13 = por %p1307_p12, %p1306_p11 }
 0x374   : > { %p1309_p0 = pnand %p1308_p13, %p1302_p8 }
 0x376   : > { %1312 = shalt.err (!%p1309_p0)
}
 0x377   : > { %1236 = dma.vmem_to_hbm [thread:$0]  (%p1460_p5), %s1664_s27, 16, %s1662_s18, %s1000_s19  }
 0x378 PF: > { %p1242_p1 = scmp.ge.s32.totalorder %s1347_s26, 2  ;;  %s1024_s0 = sand.u32 1, %s1335_s23  }
 0x379   : > { %s1025_s20 = scalar_lea.sflag [#allocation4], %s1024_s0 }
 0x37a   : > { %p1239_p2 = pnand %p1242_p1, %p1464_p6 }
 0x37c   : > { %1330 = dma.done.wait (!%p1239_p2), %s1025_s20, 16  }
 0x37d   : > { %1332 = vsyncadd (!%p1239_p2), %s1025_s20, 4294967280  ;;  %p24_p3 = scmp.ge.s32.totalorder %s1447_s28, 4   ;;  %s1727_s23 = smov %s1339_s24 }
 0x37e   : > { %s1728_s24 = smov %s1343_s25  ;;  %s1729_s25 = smov %s1458_s13 }
 0x37f   : > { %s1730_s26 = smov %s1447_s28  ;;  %26 = sbr.rel (!%p24_p3) target bundleno = 6 (0x6), region = 106 }
 0x386   :  { %1029 = vsyncpa [#allocation4], 1 }
 0x387   :  { %1031 = vsyncpa [#allocation4 + $0x1], 1 }

</bundles_post_ra>
